<compile_context>
chip_gen: v5e
topology: v5e:2x2
jax: 0.10.0
libtpu: 0.0.40
codegen_flags: <defaults>
</compile_context>

<pallas_src>
import jax
import jax.numpy as jnp
from jax.experimental import pallas as pl
from jax.experimental.pallas import tpu as pltpu


def _model_kernel(inp_ew_ref, x1_ref, x2_ref, inp_mm_ref, out_ref, acc_ref):
    k = pl.program_id(2)

    @pl.when(k == 0)
    def _():
        acc_ref[...] = jnp.zeros_like(acc_ref)

    # MXU partial product (bf16 operands, f32 accumulate). No per-k scaling.
    acc_ref[...] += jnp.dot(
        x2_ref[...], inp_mm_ref[...], preferred_element_type=jnp.float32
    )

    # Fused epilogue: elementwise term + the 1.2 scale, applied exactly once.
    @pl.when(k == pl.num_programs(2) - 1)
    def _():
        out_ref[...] = (
            inp_ew_ref[...] * x1_ref[...] + acc_ref[...] * 1.2
        ).astype(out_ref.dtype)


def _round_up(x, m):
    return (x + m - 1) // m * m


def model_forward(inp, x1, x2, *, tm=128, tn=256, tk=128):
    M, N = inp.shape
    assert x1.shape == (M, N)
    assert x2.shape == (M, M)
    # The matmul K dimension equals M (x2 is (M, M)); tm==tk lets one padded
    # size serve both roles of inp.
    assert tm == tk

    Mp = _round_up(M, tm)
    Np = _round_up(N, tn)

    # Zero-pad so every tile is full and MXU-aligned (zero K-padding adds
    # nothing to the accumulation; padded output rows/cols are sliced off).
    inp_p = jnp.pad(inp, ((0, Mp - M), (0, Np - N)))
    x1_p = jnp.pad(x1, ((0, Mp - M), (0, Np - N)))
    x2_p = jnp.pad(x2, ((0, Mp - M), (0, Mp - M)))

    # bf16 only for the MXU operands; elementwise path stays f32.
    x2_mm = x2_p.astype(jnp.bfloat16)
    inp_mm = inp_p.astype(jnp.bfloat16)

    grid = (Mp // tm, Np // tn, Mp // tk)

    cost = pl.CostEstimate(
        flops=2 * Mp * Mp * Np + 3 * Mp * Np,
        transcendentals=0,
        bytes_accessed=(3 * Mp * Np * 4) + (Mp * Mp * 2) + (Mp * Np * 2),
    )

    out_p = pl.pallas_call(
        _model_kernel,
        out_shape=jax.ShapeDtypeStruct((Mp, Np), inp.dtype),
        grid_spec=pltpu.PrefetchScalarGridSpec(
            num_scalar_prefetch=0,
            grid=grid,
            in_specs=[
                # inp, elementwise role (f32): fetched once per (i, j).
                pl.BlockSpec((tm, tn), lambda i, j, k: (i, j)),
                # x1 (f32): fetched once per (i, j).
                pl.BlockSpec((tm, tn), lambda i, j, k: (i, j)),
                # x2, matmul LHS (bf16): (i, k) tiles.
                pl.BlockSpec((tm, tk), lambda i, j, k: (i, k)),
                # inp, matmul RHS role (bf16): (k, j) tiles.
                pl.BlockSpec((tk, tn), lambda i, j, k: (k, j)),
            ],
            out_specs=pl.BlockSpec((tm, tn), lambda i, j, k: (i, j)),
            scratch_shapes=[pltpu.VMEM((tm, tn), jnp.float32)],
        ),
        compiler_params=pltpu.CompilerParams(
            dimension_semantics=("parallel", "parallel", "arbitrary"),
        ),
        cost_estimate=cost,
    )(inp_p, x1_p, x2_mm, inp_mm)

    return out_p[:M, :N]


def _reference(inp, x1, x2):
    # Match the kernel's matmul precision: bf16 operands, f32 accumulation.
    x2_b = x2.astype(jnp.bfloat16).astype(jnp.float32)
    inp_b = inp.astype(jnp.bfloat16).astype(jnp.float32)
    return inp * x1 + 1.2 * jnp.dot(x2_b, inp_b, preferred_element_type=jnp.float32)


if __name__ == "__main__":
    key = jax.random.PRNGKey(0)

    # Test 1: tile-aligned shapes -> grid (2, 2, 2), exercises accumulator,
    # epilogue fusion and multi-tile pipelining.
    # Test 2: non-aligned shapes -> exercises the zero-padding path.
    for (M, N) in [(256, 512), (96, 160)]:
        k_inp, k_x1, k_x2, key = jax.random.split(key, 4)
        inp = jax.random.normal(k_inp, (M, N), dtype=jnp.float32)
        x1 = jax.random.normal(k_x1, (M, N), dtype=jnp.float32)
        x2 = jax.random.normal(k_x2, (M, M), dtype=jnp.float32)

        out = model_forward(inp, x1, x2)
        jax.block_until_ready(out)

        ref = _reference(inp, x1, x2)
        assert out.shape == ref.shape
        assert jnp.allclose(out, ref, atol=1e-2, rtol=1e-2), (
            f"mismatch vs reference at shape ({M},{N})"
        )

    print("KERNEL_OK")
</pallas_src>

<mosaic_0001>
module attributes {stable_mosaic.version = 11 : i64} {
  func.func @_model_kernel(%arg0: i32, %arg1: i32, %arg2: i32, %arg3: memref<128x256xf32, #tpu.memory_space<vmem>>, %arg4: memref<128x256xf32, #tpu.memory_space<vmem>>, %arg5: memref<128x128xbf16, #tpu.memory_space<vmem>>, %arg6: memref<128x256xbf16, #tpu.memory_space<vmem>>, %arg7: memref<128x256xf32, #tpu.memory_space<vmem>>, %arg8: memref<128x256xf32, #tpu.memory_space<vmem>>) attributes {dimension_semantics = [#tpu.dimension_semantics<parallel>, #tpu.dimension_semantics<parallel>, #tpu.dimension_semantics<arbitrary>], iteration_bounds = array<i64: 2, 2, 2>, scalar_prefetch = 0 : i64, scratch_operands = 1 : i64, tpu.core_type = #tpu.core_type<tc>, window_params = [{transform_indices = @transform_0, window_bounds = array<i64: 128, 256>}, {transform_indices = @transform_1, window_bounds = array<i64: 128, 256>}, {transform_indices = @transform_2, window_bounds = array<i64: 128, 128>}, {transform_indices = @transform_3, window_bounds = array<i64: 128, 256>}, {transform_indices = @transform_4, window_bounds = array<i64: 128, 256>}]} {
    %c0_i32 = arith.constant 0 : i32
    %0 = arith.cmpi eq, %arg2, %c0_i32 : i32
    %1 = arith.extui %0 : i1 to i32
    %c0_i32_0 = arith.constant 0 : i32
    %2 = arith.cmpi ne, %1, %c0_i32_0 : i32
    scf.if %2 {
      %cst_9 = arith.constant 0.000000e+00 : f32
      %12 = vector.broadcast %cst_9 : f32 to vector<128x256xf32>
      %c0_10 = arith.constant 0 : index
      %c0_11 = arith.constant 0 : index
      %13 = vector.load %arg8[%c0_10, %c0_11] : memref<128x256xf32, #tpu.memory_space<vmem>>, vector<128x256xf32>
      tpu.vector_store %arg8[%c0_10, %c0_11], %12 {strides = array<i32>} : memref<128x256xf32, #tpu.memory_space<vmem>>, vector<128x256xf32>,
    } else {
    }
    %c0 = arith.constant 0 : index
    %c0_1 = arith.constant 0 : index
    %3 = vector.load %arg8[%c0, %c0_1] : memref<128x256xf32, #tpu.memory_space<vmem>>, vector<128x256xf32>
    %c0_2 = arith.constant 0 : index
    %c0_3 = arith.constant 0 : index
    %4 = vector.load %arg5[%c0_2, %c0_3] : memref<128x128xbf16, #tpu.memory_space<vmem>>, vector<128x128xbf16>
    %c0_4 = arith.constant 0 : index
    %c0_5 = arith.constant 0 : index
    %5 = vector.load %arg6[%c0_4, %c0_5] : memref<128x256xbf16, #tpu.memory_space<vmem>>, vector<128x256xbf16>
    %cst = arith.constant dense<0.000000e+00> : vector<128x256xf32>
    %6 = tpu.matmul %4, %5, %cst {dimension_numbers = #tpu.dot_dimension_numbers<[1], [0], [0], [1], [0, 0, 1, 1], [], []>} : vector<128x128xbf16>, vector<128x256xbf16>, vector<128x256xf32> -> vector<128x256xf32>
    %7 = arith.addf %3, %6 : vector<128x256xf32>
    %c0_6 = arith.constant 0 : index
    %c0_7 = arith.constant 0 : index
    %8 = vector.load %arg8[%c0_6, %c0_7] : memref<128x256xf32, #tpu.memory_space<vmem>>, vector<128x256xf32>
    tpu.vector_store %arg8[%c0_6, %c0_7], %7 {strides = array<i32>} : memref<128x256xf32, #tpu.memory_space<vmem>>, vector<128x256xf32>,
    %c1_i32 = arith.constant 1 : i32
    %9 = arith.cmpi eq, %arg2, %c1_i32 : i32
    %10 = arith.extui %9 : i1 to i32
    %c0_i32_8 = arith.constant 0 : i32
    %11 = arith.cmpi ne, %10, %c0_i32_8 : i32
    scf.if %11 {
      %c0_9 = arith.constant 0 : index
      %c0_10 = arith.constant 0 : index
      %12 = vector.load %arg3[%c0_9, %c0_10] : memref<128x256xf32, #tpu.memory_space<vmem>>, vector<128x256xf32>
      %c0_11 = arith.constant 0 : index
      %c0_12 = arith.constant 0 : index
      %13 = vector.load %arg4[%c0_11, %c0_12] : memref<128x256xf32, #tpu.memory_space<vmem>>, vector<128x256xf32>
      %14 = arith.mulf %12, %13 : vector<128x256xf32>
      %c0_13 = arith.constant 0 : index
      %c0_14 = arith.constant 0 : index
      %15 = vector.load %arg8[%c0_13, %c0_14] : memref<128x256xf32, #tpu.memory_space<vmem>>, vector<128x256xf32>
      %cst_15 = arith.constant 1.200000e+00 : f32
      %16 = vector.broadcast %cst_15 : f32 to vector<128x256xf32>
      %17 = arith.mulf %15, %16 : vector<128x256xf32>
      %18 = arith.addf %14, %17 : vector<128x256xf32>
      %c0_16 = arith.constant 0 : index
      %c0_17 = arith.constant 0 : index
      %19 = vector.load %arg7[%c0_16, %c0_17] : memref<128x256xf32, #tpu.memory_space<vmem>>, vector<128x256xf32>
      tpu.vector_store %arg7[%c0_16, %c0_17], %18 {strides = array<i32>} : memref<128x256xf32, #tpu.memory_space<vmem>>, vector<128x256xf32>,
    } else {
    }
    return
  }
  func.func @transform_0(%arg0: i32, %arg1: i32, %arg2: i32) -> (i32, i32) {
    %c0_i32 = arith.constant 0 : i32
    return %arg0, %arg1 : i32, i32
  }
  func.func @transform_1(%arg0: i32, %arg1: i32, %arg2: i32) -> (i32, i32) {
    %c0_i32 = arith.constant 0 : i32
    return %arg0, %arg1 : i32, i32
  }
  func.func @transform_2(%arg0: i32, %arg1: i32, %arg2: i32) -> (i32, i32) {
    %c0_i32 = arith.constant 0 : i32
    return %arg0, %arg2 : i32, i32
  }
  func.func @transform_3(%arg0: i32, %arg1: i32, %arg2: i32) -> (i32, i32) {
    %c0_i32 = arith.constant 0 : i32
    return %arg2, %arg1 : i32, i32
  }
  func.func @transform_4(%arg0: i32, %arg1: i32, %arg2: i32) -> (i32, i32) {
    %c0_i32 = arith.constant 0 : i32
    return %arg0, %arg1 : i32, i32
  }
}

</mosaic_0001>

<bundles_post_ra>
// kernel: tpu_custom_call.1
= control target key start
LH: loop header
LB: loop body
LE: loop exit
PB: predicated region body
PF: predicated region fallthrough
CT: control target
= control target key end

     0   :  { %s2358_s0 = inlined_call_operand.hbm [shape: f32[256,512], index: 0, kind: input, shape index: {}]   ;;  %s2359_s1 = inlined_call_operand.hbm [shape: f32[256,512], index: 1, kind: input, shape index: {}]   ;;  %s2360_s2 = inlined_call_operand.hbm [shape: bf16[256,256], index: 2, kind: input, shape index: {}]   ;;  %s2361_s3 = inlined_call_operand.hbm [shape: bf16[256,512], index: 3, kind: input, shape index: {}]   ;;  %s2362_s4 = inlined_call_operand.hbm [shape: f32[256,512], index: 4, kind: output, shape index: {}]  }
   0x1   :  { %2379 = sst [smem:[#allocation31_spill]] %s2358_s0 }
   0x2   :  { %2380 = sst [smem:[#allocation32_spill]] %s2359_s1 }
   0x3   :  { %2381 = sst [smem:[#allocation33_spill]] %s2360_s2 }
   0x4   :  { %2382 = sst [smem:[#allocation34_spill]] %s2361_s3 }
   0x5   :  { %2383 = sst [smem:[#allocation35_spill]] %s2362_s4 }
   0x6   :  { %9 = vsyncpa [#allocation4], 0 }
   0x7   :  { %11 = vsyncpa [#allocation4 + $0x1], 0 }
   0x8   :  { %12 = vsyncpa [#allocation7], 0 }
   0x9   :  { %14 = vsyncpa [#allocation7 + $0x1], 0 }
   0xa   :  { %15 = vsyncpa [#allocation10], 0 }
   0xb   :  { %17 = vsyncpa [#allocation10 + $0x1], 0 }
   0xc   :  { %18 = vsyncpa [#allocation5], 0 }
   0xd   :  { %20 = vsyncpa [#allocation5 + $0x1], 0  ;;  %s1876_s15 = smov 0   ;;  %s1878_s16 = smov 0  }
   0xe   :  { %s1880_s17 = smov 0   ;;  %s1882_s18 = smov 0  }
   0xf   :  { %s1884_s19 = smov 0   ;;  %s1886_s20 = smov 0  }
  0x10   :  { %s1888_s21 = smov 0   ;;  %s1890_s22 = smov 0  }
  0x11   :  { %s1892_s23 = smov 0   ;;  %s1894_s24 = smov 0  }
  0x12   :  { %s1896_s25 = smov 0   ;;  %s1898_s26 = smov 0  }
  0x13   :  { %s1900_s27 = smov 0   ;;  %s1902_s28 = smov 0  }
  0x14   :  { %s1904_s29 = smov 0   ;;  %s1906_s30 = smov 0  }
  0x15 LB: > { %2384 = sst [smem:[#allocation17_spill]] %s1778_s15  ;;  %s1957_s5 = sadd.s32 4294967295, %s1838_s30   ;;  %s1838_s30 = sphi %s1906_s30, %s26_s30   ;;  %s1834_s29 = sphi %s1904_s29, %s2436_s29   ;;  %s1830_s28 = sphi %s1902_s28, %s2449_s28   ;;  %s1826_s27 = sphi %s1900_s27, %s2448_s27   ;;  %s1822_s26 = sphi %s1898_s26, %s2433_s26   ;;  %s1818_s25 = sphi %s1896_s25, %s2447_s25   ;;  %s1814_s24 = sphi %s1894_s24, %s2446_s24   ;;  %s1810_s23 = sphi %s1892_s23, %s2445_s23   ;;  %s1806_s22 = sphi %s1890_s22, %s2444_s22   ;;  %s1802_s21 = sphi %s1888_s21, %s2431_s21   ;;  %s1798_s20 = sphi %s1886_s20, %s2443_s20   ;;  %s1794_s19 = sphi %s1884_s19, %s2442_s19   ;;  %s1790_s18 = sphi %s1882_s18, %s2441_s18   ;;  %s1786_s17 = sphi %s1880_s17, %s2440_s17   ;;  %s1782_s16 = sphi %s1878_s16, %s2439_s16   ;;  %s1778_s15 = sphi %s1876_s15, %s2437_s15  }
  0x16   : > { %2385 = sst [smem:[#allocation18_spill]] %s1802_s21  ;;  %s1198_s6 = sadd.s32 4294967294, %s1838_s30  }
  0x17   : > { %2386 = sst [smem:[#allocation19_spill]] %s1806_s22  ;;  %p61_p0 = scmp.ne.s32.totalorder %s1810_s23, %s1806_s22 }
  0x18   : > { %2387 = sst [smem:[#allocation20_spill]] %s1814_s24  ;;  %p62_p1 = scmp.eq.s32.totalorder %s1838_s30, 0 }
  0x19   : > { %2388 = sst [smem:[#allocation21_spill]] %s1818_s25  ;;  %p67_p2 = scmp.ne.s32.totalorder %s1806_s22, %s1802_s21 }
  0x1a   : > { %2389 = sst [smem:[#allocation22_spill]] %s1822_s26  ;;  %p2374_p3 = scmp.eq.s32.totalorder %s1957_s5, 0 }
  0x1b   : > { %2390 = sst [smem:[#allocation23_spill]] %s1834_s29  ;;  %p177_p4 = scmp.eq.s32.totalorder %s1957_s5, 7 }
  0x1c   : > { %p63_p5 = por %p62_p1, %p61_p0  ;;  %p183_p6 = scmp.eq.s32.totalorder %s1198_s6, 7 }
  0x1d   : > { %p1974_p7 = por %p2374_p3, %p67_p2  ;;  %p1978_p8 = por %p177_p4, %p61_p0 }
  0x1e   : > { %p1982_p9 = por %p183_p6, %p67_p2  ;;  %p1403_p10 = scmp.lt.s32.totalorder %s1838_s30, 8 }
  0x1f   : > { %s2391_s10 = scalar_select %p1974_p7, 1, 0 }
  0x20   : > { %s2393_s11 = scalar_select %p1978_p8, 1, 0 }
  0x21   : > { %2392 = sst [smem:[#allocation24_spill]] %s2391_s10  ;;  %s203_s13 = sand.u32 1, %s1810_s23  }
  0x22   : > { %2394 = sst [smem:[#allocation25_spill]] %s2393_s11  ;;  %s1201_s14 = sshll.u32 %s203_s13, 8 }
  0x23   : > { %s2395_s12 = scalar_select %p1982_p9, 1, 0 }
  0x24   : > { %s2371_s9 = sshll.u32 %s1830_s28, 1  ;;  %s1331_s8 = sshll.u32 %s1834_s29, 6 }
  0x25   : > { %2396 = sst [smem:[#allocation26_spill]] %s2395_s12  ;;  %p1992_p11 = pnand %p1403_p10, %p63_p5 }
  0x26   : > { %s213_s7 = sadd.s32 %s1331_s8, %s2371_s9  ;;  %s228_s4 = sand.u32 1, %s1838_s30  }
  0x27   : > { %s1205_s21 = sshll.u32 %s213_s7, 3  ;;  %s2398_s1 = sld [smem:[#allocation32_spill]] }
  0x28   : > { %s232_s24 = scalar_lea.vmem [#allocation6], %s1201_s14  ;;  %s2002_s22 = scalar_lea.sflag [#allocation7], %s228_s4 }
  0x29   : > { %s243_s10 = sshll.u32 %s232_s24, 4  ;;  %s1840_s3 = smov 512   ;;  %s244_s10 = int_to_ptr.vmem [resolvable:$true] %s243_s10 }
  0x2a   : > { %s2372_s15 = smov 256   ;;  %s1842_s8 = smov 16  }
  0x2b   : > { %p1220_p12 = scmp.ge.s32.totalorder %s1838_s30, 1  ;;  %p300_p13 = scmp.lt.s32.totalorder %s1838_s30, 9 }
  0x2c   : > { %s2400_s0 = sld [smem:[#allocation31_spill]]  ;;  %s38_s9 = sadd.s32 1, %s1826_s27 }
  0x2d   : > { %s240_s12 = scalar_lea.hbm %s2398_s1, %s1205_s21  ;;  %p2010_p0 = pnand %p1220_p12, %p300_p13 }
  0x2e   : > { %s241_s25 = sshll.u32 %s240_s12, 4  ;;  %s207_s12 = scalar_lea.vmem [#allocation3], %s1201_s14  ;;  %s242_s25 = int_to_ptr.hbm [resolvable:$true] %s241_s25 }
  0x2f   : > { %1392 = dma.hbm_to_vmem [thread:$0]  (!%p1992_p11), %s242_s25, 4096, %s244_s10, %s2002_s22, %s1840_s3, %s2372_s15, %s1842_s8  }
  0x30   : > { %s218_s25 = sshll.u32 %s207_s12, 4  ;;  %s204_s10 = scalar_lea.sflag [#allocation4], %s203_s13  ;;  %s219_s25 = int_to_ptr.vmem [resolvable:$true] %s218_s25 }
  0x31   : > { %p39_p2 = scmp.ge.s32.totalorder %s38_s9, 2  ;;  %p117_p4 = scmp.ne.s32.totalorder %s1798_s20, %s1794_s19 }
  0x32   : > { %s215_s7 = scalar_lea.hbm %s2400_s0, %s1205_s21  ;;  %p123_p5 = scmp.ne.s32.totalorder %s1794_s19, %s1790_s18 }
  0x33   : > { %s216_s11 = sshll.u32 %s215_s7, 4  ;;  %s255_s21 = sand.u32 1, %s1798_s20   ;;  %s217_s11 = int_to_ptr.hbm [resolvable:$true] %s216_s11 }
  0x34   : > { %1389 = dma.hbm_to_vmem [thread:$0]  (!%p1992_p11), %s217_s11, 4096, %s219_s25, %s204_s10, %s1840_s3, %s2372_s15, %s1842_s8  }
  0x35   : > { %s2451_s9 = smov (%p39_p2, %s38_s9), 0  ;;  %s2402_s14 = sadd.s32 1, %s1830_s28 }
  0x36   : > { %2401 = sst [smem:[#allocation27_spill]] %s2451_s9  ;;  %s2453_s14 = smov (!%p39_p2, %s2402_s14), %s1830_s28 }
  0x37   : > { %s2034_s26 = ssub.s32 %s1826_s27, %s2451_s9  ;;  %p2038_p6 = por %p117_p4, %p62_p1 }
  0x38   : > { %p43_p11 = scmp.ge.s32.totalorder %s2453_s14, 2  ;;  %p2044_p12 = por %p123_p5, %p2374_p3 }
  0x39   : > { %s1211_s18 = sshll.u32 %s255_s21, 6  ;;  %s1333_s6 = sshll.u32 %s1834_s29, 5 }
  0x3a   : > { %s2455_s14 = smov (%p43_p11, %s2453_s14), 0  ;;  %s2406_s8 = sadd.s32 1, %s1834_s29 }
  0x3b   : > { %2405 = sst [smem:[#allocation28_spill]] %s2455_s14  ;;  %s2457_s8 = smov (!%p43_p11, %s2406_s8), %s1834_s29 }
  0x3c   : > { %s50_s7 = ssub.s32 %s1830_s28, %s2455_s14  ;;  %p47_p13 = scmp.ge.s32.totalorder %s2457_s8, 2 }
  0x3d   : > { %s262_s11 = sadd.s32 %s1826_s27, %s1333_s6  ;;  %s257_s25 = scalar_lea.vmem [#allocation8], %s1211_s18 }
  0x3e   : > { %s1214_s12 = sshll.u32 %s262_s11, 2  ;;  %s267_s10 = sshll.u32 %s257_s25, 4  ;;  %s268_s10 = int_to_ptr.vmem [resolvable:$true] %s267_s10 }
  0x3f   : > { %s2459_s8 = smov (%p47_p13, %s2457_s8), 0  ;;  %s2408_s2 = sld [smem:[#allocation33_spill]] }
  0x40   : > { %2407 = sst [smem:[#allocation29_spill]] %s2459_s8  ;;  %s49_s0 = ssub.s32 %s1834_s29, %s2459_s8 }
  0x41   : > { %s51_s6 = sor.u32 %s50_s7, %s49_s0  ;;  %s2409_s14 = sld [smem:[#allocation17_spill]] }
  0x42   : > { %s107_s18 = sor.u32 %s2034_s26, %s49_s0  ;;  %p52_p2 = scmp.eq.s32.totalorder %s51_s6, 0 }
  0x43   : > { %p108_p4 = scmp.eq.s32.totalorder %s107_s18, 0  ;;  %p1393_p5 = pnand %p1403_p10, %p2038_p6 }
  0x44   : > { %s2410_s15 = sadd.s32 1, %s1810_s23  ;;  %s2377_s25 = smov 128  }
  0x45   : > { %s264_s4 = scalar_lea.hbm %s2408_s2, %s1214_s12  ;;  %s1844_s0 = smov 64  }
  0x46   : > { %s265_s1 = sshll.u32 %s264_s4, 4  ;;  %s2412_s4 = sadd.s32 1, %s1798_s20  ;;  %s266_s1 = int_to_ptr.hbm [resolvable:$true] %s265_s1 }
  0x47   : > { %s2072_s11 = scalar_select %p52_p2, %s1810_s23, %s2410_s15  }
  0x48   : > { %s2077_s12 = scalar_select %p108_p4, %s1798_s20, %s2412_s4  }
  0x49   : > { %2411 = sst [smem:[#allocation30_spill]] %s2072_s11  ;;  %s1845_s21 = smov 4  }
  0x4a   : > { %1395 = dma.hbm_to_vmem [thread:$0]  (!%p1393_p5), %s266_s1, 1024, %s268_s10, %s2002_s22, %s2377_s25, %s1844_s0, %s1845_s21  }
  0x4b   : > { %s135_s6 = sor.u32 %s2034_s26, %s50_s7  ;;  %s138_s18 = sadd.s32 1, %s1786_s17 }
  0x4c   : > { %p136_p11 = scmp.eq.s32.totalorder %s135_s6, 0  ;;  %p145_p13 = scmp.ne.s32.totalorder %s1786_s17, %s1782_s16 }
  0x4d   : > { %p151_p3 = scmp.ne.s32.totalorder %s1782_s16, %s2409_s14  ;;  %s277_s3 = sand.u32 1, %s1786_s17  }
  0x4e   : > { %s2089_s2 = scalar_select %p136_p11, %s1786_s17, %s138_s18  }
  0x4f   : > { %p147_p6 = por %p145_p13, %p62_p1  ;;  %p2413_p2 = scmp.eq.s32.totalorder %s1957_s5, 0 }
  0x50   : > { %s1215_s4 = sshll.u32 %s277_s3, 7  ;;  %s1334_s8 = sshll.u32 %s1826_s27, 6 }
  0x51   : > { %p2095_p4 = por %p151_p3, %p2413_p2  ;;  %s2415_s9 = sshll.u32 %s1830_s28, 1 }
  0x52   : > { %s287_s1 = sadd.s32 %s1334_s8, %s2415_s9  ;;  %s281_s22 = scalar_lea.vmem [#allocation9], %s1215_s4 }
  0x53   : > { %s292_s26 = sshll.u32 %s281_s22, 4  ;;  %s1219_s7 = sshll.u32 %s287_s1, 2  ;;  %s293_s26 = int_to_ptr.vmem [resolvable:$true] %s292_s26 }
  0x54   : > { %s2416_s0 = sld [smem:[#allocation34_spill]]  ;;  %p1396_p5 = pnand %p1403_p10, %p147_p6 }
  0x55   : > { %s278_s18 = scalar_lea.sflag [#allocation10], %s277_s3  ;;  %s1846_s25 = smov 8  }
  0x56   : > { %s2417_s29 = smov 128   ;;  %s2418_s11 = smov 256  }
  0x57   : > { %s2419_s9 = sld [smem:[#allocation19_spill]] (!%p2010_p0) }
  0x58   : > { %304 = sbr.rel (%p2010_p0) target bundleno = 448 (0x1c0), region = 36 }
  0x5a   : > { %s289_s21 = scalar_lea.hbm %s2416_s0, %s1219_s7 }
  0x5b   : > { %s290_s6 = sshll.u32 %s289_s21, 4  ;;  %s291_s6 = int_to_ptr.hbm [resolvable:$true] %s290_s6 }
  0x5c   : > { %1398 = dma.hbm_to_vmem [thread:$0]  (!%p1396_p5), %s291_s6, 2048, %s293_s26, %s278_s18, %s2418_s11, %s2417_s29, %s1846_s25  }
  0x5d   : > { %s2112_s4 = sand.u32 1, %s2419_s9  }
  0x5e   : > { %s1221_s1 = sshll.u32 %s2112_s4, 8  ;;  %s307_s22 = scalar_lea.sflag [#allocation4], %s2112_s4 }
  0x5f   : > { %s2116_s7 = scalar_lea.vmem [#allocation3], %s1221_s1 }
  0x60   : > { %1757 = dma.done.wait (%p1974_p7), %s307_s22, 4096  }
  0x61   : > { %1759 = vsyncadd (%p1974_p7), %s307_s22, 4294963200  ;;  %s316_s29 = sand.u32 1, %s1957_s5   ;;  %s2123_s11 = scalar_lea.vmem [#allocation6], %s1221_s1 }
  0x62   : > { %s317_s24 = scalar_lea.sflag [#allocation7], %s316_s29 }
  0x63   : > { %1761 = dma.done.wait (%p1974_p7), %s317_s24, 4096  }
  0x64   : > { %1763 = vsyncadd (%p1974_p7), %s317_s24, 4294963200  ;;  %s328_s25 = sand.u32 1, %s1794_s19  }
  0x65   : > { %s1223_s3 = sshll.u32 %s328_s25, 6 }
  0x66   : > { %s2130_s26 = scalar_lea.vmem [#allocation8], %s1223_s3 }
  0x67   : > { %1765 = dma.done.wait (%p2044_p12), %s317_s24, 1024  }
  0x68   : > { %1767 = vsyncadd (%p2044_p12), %s317_s24, 4294966272  ;;  %s336_s5 = sand.u32 1, %s1782_s16  }
  0x69   : > { %s1224_s10 = sshll.u32 %s336_s5, 7  ;;  %s337_s14 = scalar_lea.sflag [#allocation10], %s336_s5 }
  0x6a   : > { %s2137_s0 = scalar_lea.vmem [#allocation9], %s1224_s10 }
  0x6b   : > { %1769 = dma.done.wait (%p2095_p4), %s337_s14, 2048  }
  0x6c   : > { %1771 = vsyncadd (%p2095_p4), %s337_s14, 4294965248  ;;  %s2143_s21 = scalar_lea.vmem [#allocation11], %s1221_s1  ;;  %s2421_s6 = sld [smem:[#allocation20_spill]] }
  0x72   : > { %p1226_p1 = scmp.ne.s32.totalorder %s2421_s6, 0 }
  0x74   : > { %393 = sbr.rel (%p1226_p1) target bundleno = 154 (0x9a), region = 56 }
  0x79   : > { %v1847_v0 = vmov 0.0  }
  0x7a   : > { %394 = vst [vmem:[#allocation2 + $0xb0] sm:$0xff] %v1847_v0 }
  0x7b   : > { %395 = vst [vmem:[#allocation2] sm:$0xff] %v1847_v0 }
  0x7c   : > { %396 = vst [vmem:[#allocation2 + $0xd8] sm:$0xff] %v1847_v0 }
  0x7d   : > { %397 = vst [vmem:[#allocation2 + $0x18] sm:$0xff] %v1847_v0 }
  0x7e   : > { %398 = vst [vmem:[#allocation2 + $0x50] sm:$0xff] %v1847_v0 }
  0x7f   : > { %399 = vst [vmem:[#allocation2 + $0x68] sm:$0xff] %v1847_v0 }
  0x80   : > { %400 = vst [vmem:[#allocation2 + $0x30] sm:$0xff] %v1847_v0 }
  0x81   : > { %401 = vst [vmem:[#allocation2 + $0x48] sm:$0xff] %v1847_v0 }
  0x82   : > { %402 = vst [vmem:[#allocation2 + $0x80] sm:$0xff] %v1847_v0 }
  0x83   : > { %403 = vst [vmem:[#allocation2 + $0x88] sm:$0xff] %v1847_v0 }
  0x84   : > { %404 = vst [vmem:[#allocation2 + $0xe8] sm:$0xff] %v1847_v0 }
  0x85   : > { %405 = vst [vmem:[#allocation2 + $0xb8] sm:$0xff] %v1847_v0 }
  0x86   : > { %406 = vst [vmem:[#allocation2 + $0x60] sm:$0xff] %v1847_v0 }
  0x87   : > { %407 = vst [vmem:[#allocation2 + $0xf0] sm:$0xff] %v1847_v0 }
  0x88   : > { %408 = vst [vmem:[#allocation2 + $0x8] sm:$0xff] %v1847_v0 }
  0x89   : > { %409 = vst [vmem:[#allocation2 + $0x78] sm:$0xff] %v1847_v0 }
  0x8a   : > { %410 = vst [vmem:[#allocation2 + $0x38] sm:$0xff] %v1847_v0 }
  0x8b   : > { %411 = vst [vmem:[#allocation2 + $0x58] sm:$0xff] %v1847_v0 }
  0x8c   : > { %412 = vst [vmem:[#allocation2 + $0x40] sm:$0xff] %v1847_v0 }
  0x8d   : > { %413 = vst [vmem:[#allocation2 + $0xc8] sm:$0xff] %v1847_v0 }
  0x8e   : > { %414 = vst [vmem:[#allocation2 + $0xe0] sm:$0xff] %v1847_v0 }
  0x8f   : > { %415 = vst [vmem:[#allocation2 + $0x90] sm:$0xff] %v1847_v0 }
  0x90   : > { %416 = vst [vmem:[#allocation2 + $0x70] sm:$0xff] %v1847_v0 }
  0x91   : > { %417 = vst [vmem:[#allocation2 + $0xc0] sm:$0xff] %v1847_v0 }
  0x92   : > { %418 = vst [vmem:[#allocation2 + $0xa8] sm:$0xff] %v1847_v0 }
  0x93   : > { %419 = vst [vmem:[#allocation2 + $0xd0] sm:$0xff] %v1847_v0 }
  0x94   : > { %420 = vst [vmem:[#allocation2 + $0x10] sm:$0xff] %v1847_v0 }
  0x95   : > { %421 = vst [vmem:[#allocation2 + $0x28] sm:$0xff] %v1847_v0 }
  0x96   : > { %422 = vst [vmem:[#allocation2 + $0xa0] sm:$0xff] %v1847_v0 }
  0x97   : > { %423 = vst [vmem:[#allocation2 + $0xf8] sm:$0xff] %v1847_v0 }
  0x98   : > { %424 = vst [vmem:[#allocation2 + $0x20] sm:$0xff] %v1847_v0 }
  0x99   : > { %425 = vst [vmem:[#allocation2 + $0x98] sm:$0xff] %v1847_v0 }
  0x9a PF: > { %v1317_v1 = vld [vmem:[%s2137_s0 + $0x70] sm:$0xf]  ;;  %v1358_v2 = vld [vmem:[%s2137_s0 + $0x74] sm:$0xf0]  ;;  %v1357_v3 = vld [vmem:[%s2137_s0 + $0x74] sm:$0xf] }
  0x9b   : > { %v1318_v4 = vor.u32 %v1358_v2, %v1317_v1  ;;  %v1319_v5 = vld [vmem:[%s2137_s0 + $0x78] sm:$0xf0]  ;;  %v1309_v6 = vld [vmem:[%s2137_s0 + $0x60] sm:$0xf]  ;;  %v1356_v7 = vld [vmem:[%s2137_s0 + $0x64] sm:$0xf0] }
  0x9c   : > { %v1322_v8 = vor.u32 %v1357_v3, %v1319_v5  ;;  %v1355_v9 = vld [vmem:[%s2137_s0 + $0x64] sm:$0xf]  ;;  %v1311_v10 = vld [vmem:[%s2137_s0 + $0x68] sm:$0xf0]  ;;  %v1310_v11 = vor.u32 %v1356_v7, %v1309_v6  ;;  %v1301_v13 = vld [vmem:[%s2137_s0 + $0x50] sm:$0xf] }
  0x9d   : > { %618 = vmatpush.bf16.msra.mxu0 %v1318_v4  ;;  %1360 = vmatpush.bf16.msra.mxu2 %v1318_v4  ;;  %v1314_v12 = vor.u32 %v1355_v9, %v1311_v10  ;;  %v1354_v14 = vld [vmem:[%s2137_s0 + $0x54] sm:$0xf0]  ;;  %v1353_v15 = vld [vmem:[%s2137_s0 + $0x54] sm:$0xf]  ;;  %v1303_v16 = vld [vmem:[%s2137_s0 + $0x58] sm:$0xf0] }
  0x9e   : > { %667 = vmatpush.bf16.msra.mxu1 %v1322_v8  ;;  %1368 = vmatpush.bf16.msra.mxu3 %v1322_v8  ;;  %v1302_v17 = vor.u32 %v1354_v14, %v1301_v13  ;;  %v1306_v18 = vor.u32 %v1353_v15, %v1303_v16  ;;  %v1293_v19 = vld [vmem:[%s2137_s0 + $0x40] sm:$0xf]  ;;  %v1352_v20 = vld [vmem:[%s2137_s0 + $0x44] sm:$0xf0]  ;;  %v1351_v21 = vld [vmem:[%s2137_s0 + $0x44] sm:$0xf] }
  0x9f   : > { %v1295_v22 = vld [vmem:[%s2137_s0 + $0x48] sm:$0xf0]  ;;  %v1294_v23 = vor.u32 %v1352_v20, %v1293_v19  ;;  %v1285_v25 = vld [vmem:[%s2137_s0 + $0x30] sm:$0xf]  ;;  %v1350_v26 = vld [vmem:[%s2137_s0 + $0x34] sm:$0xf0] }
  0xa0   : > { %v1298_v24 = vor.u32 %v1351_v21, %v1295_v22  ;;  %v1349_v27 = vld [vmem:[%s2137_s0 + $0x34] sm:$0xf]  ;;  %v1287_v28 = vld [vmem:[%s2137_s0 + $0x38] sm:$0xf0]  ;;  %v1286_v29 = vor.u32 %v1350_v26, %v1285_v25  ;;  %v1277_v31 = vld [vmem:[%s2137_s0 + $0x20] sm:$0xf] }
  0xa1   : > { %619 = vmatpush.bf16.msra.mxu0 %v1310_v11  ;;  %1361 = vmatpush.bf16.msra.mxu2 %v1310_v11  ;;  %v1290_v30 = vor.u32 %v1349_v27, %v1287_v28  ;;  %v1348_v32 = vld [vmem:[%s2137_s0 + $0x24] sm:$0xf0]  ;;  %v1347_v33 = vld [vmem:[%s2137_s0 + $0x24] sm:$0xf]  ;;  %v1279_v34 = vld [vmem:[%s2137_s0 + $0x28] sm:$0xf0] }
  0xa2   : > { %668 = vmatpush.bf16.msra.mxu1 %v1314_v12  ;;  %1369 = vmatpush.bf16.msra.mxu3 %v1314_v12  ;;  %v1278_v35 = vor.u32 %v1348_v32, %v1277_v31  ;;  %v1282_v36 = vor.u32 %v1347_v33, %v1279_v34  ;;  %v1269_v37 = vld [vmem:[%s2137_s0 + $0x10] sm:$0xf]  ;;  %v1346_v38 = vld [vmem:[%s2137_s0 + $0x14] sm:$0xf0]  ;;  %v1345_v39 = vld [vmem:[%s2137_s0 + $0x14] sm:$0xf] }
  0xa3   : > { %v1271_v40 = vld [vmem:[%s2137_s0 + $0x18] sm:$0xf0]  ;;  %v1270_v41 = vor.u32 %v1346_v38, %v1269_v37  ;;  %v1261_v43 = vld [vmem:[%s2137_s0] sm:$0xf]  ;;  %v1344_v44 = vld [vmem:[%s2137_s0 + $0x4] sm:$0xf0] }
  0xa4   : > { %v1274_v42 = vor.u32 %v1345_v39, %v1271_v40  ;;  %v1343_v45 = vld [vmem:[%s2137_s0 + $0x4] sm:$0xf]  ;;  %v1263_v46 = vld [vmem:[%s2137_s0 + $0x8] sm:$0xf0]  ;;  %v1262_v47 = vor.u32 %v1344_v44, %v1261_v43  ;;  %v1337_v53 = vld [vmem:[%s2130_s26 + $0x10] sm:$0xff]  ;;  %s2422_s13 = sld [smem:[#allocation20_spill]] }
  0xa5   : > { %620 = vmatpush.bf16.msra.mxu0 %v1302_v17  ;;  %1362 = vmatpush.bf16.msra.mxu2 %v1302_v17  ;;  %v1266_v48 = vor.u32 %v1343_v45, %v1263_v46  ;;  %v1335_v49 = vld [vmem:[%s2130_s26] sm:$0xff]  ;;  %v1336_v51 = vld [vmem:[%s2130_s26 + $0x8] sm:$0xff]  ;;  %v1341_v54 = vld [vmem:[%s2130_s26 + $0x30] sm:$0xff] }
  0xa6   : > { %669 = vmatpush.bf16.msra.mxu1 %v1306_v18  ;;  %1370 = vmatpush.bf16.msra.mxu3 %v1306_v18  ;;  %v1339_v50 = vld [vmem:[%s2130_s26 + $0x20] sm:$0xff]  ;;  %v1340_v52 = vld [vmem:[%s2130_s26 + $0x28] sm:$0xff]  ;;  %v1338_v55 = vld [vmem:[%s2130_s26 + $0x18] sm:$0xff] }
  0xa7   : > { %v1342_v56 = vld [vmem:[%s2130_s26 + $0x38] sm:$0xff]  ;;  %v426_v57 = vld [vmem:[#allocation2 + $0xb0] sm:$0xff]  ;;  %v427_v58 = vld [vmem:[#allocation2] sm:$0xff] }
  0xa8   : > { %v442_v63 = vld [vmem:[#allocation2 + $0x38] sm:$0xff]  ;;  %v444_v11 = vld [vmem:[#allocation2 + $0x40] sm:$0xff]  ;;  %v445_v12 = vld [vmem:[#allocation2 + $0xc8] sm:$0xff] }
  0xa9   : > { %621 = vmatpush.bf16.msra.mxu0 %v1294_v23  ;;  %1363 = vmatpush.bf16.msra.mxu2 %v1294_v23  ;;  %v443_v0 = vld [vmem:[#allocation2 + $0x58] sm:$0xff]  ;;  %v430_v14 = vld [vmem:[#allocation2 + $0x50] sm:$0xff]  ;;  %v431_v17 = vld [vmem:[#allocation2 + $0x68] sm:$0xff] }
  0xaa   : > { %670 = vmatpush.bf16.msra.mxu1 %v1298_v24  ;;  %1371 = vmatpush.bf16.msra.mxu3 %v1298_v24  ;;  %v428_v2 = vld [vmem:[#allocation2 + $0xd8] sm:$0xff]  ;;  %v446_v23 = vld [vmem:[#allocation2 + $0xe0] sm:$0xff]  ;;  %v447_v24 = vld [vmem:[#allocation2 + $0x90] sm:$0xff]  ;;  %p1323_p3 = scmp.ne.s32.totalorder %s2422_s13, 1 }
  0xab   : > { %v429_v5 = vld [vmem:[#allocation2 + $0x18] sm:$0xff]  ;;  %v432_v26 = vld [vmem:[#allocation2 + $0x30] sm:$0xff]  ;;  %v434_v38 = vld [vmem:[#allocation2 + $0x80] sm:$0xff] }
  0xad   : > { %622 = vmatpush.bf16.msra.mxu0 %v1286_v29  ;;  %1364 = vmatpush.bf16.msra.mxu2 %v1286_v29  ;;  %v433_v29 = vld [vmem:[#allocation2 + $0x48] sm:$0xff] }
  0xae   : > { %671 = vmatpush.bf16.msra.mxu1 %v1290_v30  ;;  %1372 = vmatpush.bf16.msra.mxu3 %v1290_v30 }
  0xb1   : > { %623 = vmatpush.bf16.msra.mxu0 %v1278_v35  ;;  %1365 = vmatpush.bf16.msra.mxu2 %v1278_v35  ;;  %v448_v35 = vld [vmem:[#allocation2 + $0x70] sm:$0xff] }
  0xb2   : > { %672 = vmatpush.bf16.msra.mxu1 %v1282_v36  ;;  %1373 = vmatpush.bf16.msra.mxu3 %v1282_v36  ;;  %v449_v36 = vld [vmem:[#allocation2 + $0xc0] sm:$0xff] }
  0xb5   : > { %624 = vmatpush.bf16.msra.mxu0 %v1270_v41  ;;  %1366 = vmatpush.bf16.msra.mxu2 %v1270_v41  ;;  %v435_v41 = vld [vmem:[#allocation2 + $0x88] sm:$0xff] }
  0xb6   : > { %673 = vmatpush.bf16.msra.mxu1 %v1274_v42  ;;  %1374 = vmatpush.bf16.msra.mxu3 %v1274_v42 }
  0xb9   : > { %625 = vmatpush.bf16.msra.mxu0 %v1262_v47  ;;  %1367 = vmatpush.bf16.msra.mxu2 %v1262_v47  ;;  %v450_v47 = vld [vmem:[#allocation2 + $0xa8] sm:$0xff] }
  0xba   : > { %674 = vmatpush.bf16.msra.mxu1 %v1266_v48  ;;  %1375 = vmatpush.bf16.msra.mxu3 %v1266_v48  ;;  %v451_v48 = vld [vmem:[#allocation2 + $0xd0] sm:$0xff] }
  0xbc   : > { %626 = vmatmul.bf16.vlgmr.msra.gmra.mxu0 %v1335_v49  ;;  %646 = vmatmul.bf16.vlgmr.msra.gmra.mxu2 %v1339_v50 }
  0xbd   : > { %675 = vmatmul.bf16.vlgmr.msra.gmra.mxu1 %v1335_v49  ;;  %695 = vmatmul.bf16.vlgmr.msra.gmra.mxu3 %v1339_v50  ;;  %v436_v50 = vld [vmem:[#allocation2 + $0xe8] sm:$0xff] }
  0xcc   : > { %631 = vmatmul.bf16.gmra.mxu0 %v1336_v51  ;;  %651 = vmatmul.bf16.gmra.mxu2 %v1340_v52 }
  0xcd   : > { %680 = vmatmul.bf16.gmra.mxu1 %v1336_v51  ;;  %700 = vmatmul.bf16.gmra.mxu3 %v1340_v52 }
  0xdc   : > { %636 = vmatmul.bf16.gmra.mxu0 %v1337_v53  ;;  %656 = vmatmul.bf16.gmra.mxu2 %v1341_v54 }
  0xdd   : > { %685 = vmatmul.bf16.gmra.mxu1 %v1337_v53  ;;  %705 = vmatmul.bf16.gmra.mxu3 %v1341_v54  ;;  %v437_v53 = vld [vmem:[#allocation2 + $0xb8] sm:$0xff] }
  0xec   : > { %641 = vmatmul.bf16.gmra.mxu0 %v1338_v55  ;;  %661 = vmatmul.bf16.gmra.mxu2 %v1342_v56 }
  0xed   : > { %690 = vmatmul.bf16.gmra.mxu1 %v1338_v55  ;;  %710 = vmatmul.bf16.gmra.mxu3 %v1342_v56 }
 0x139   : > { %v627_v59 = vpop.f32.mrf.mxu0 }
 0x13a   : > { %v716_v60 = vadd.f32 %v627_v59, %v426_v57  ;;  %v676_v61 = vpop.f32.mrf.mxu1  ;;  %v452_v59 = vld [vmem:[#allocation2 + $0x10] sm:$0xff] }
 0x13b   : > { %v717_v62 = vadd.f32 %v676_v61, %v427_v58 }
 0x13c   : > { %748 = vst [vmem:[#allocation2 + $0xb0] sm:$0xff] %v716_v60  ;;  %v453_v60 = vld [vmem:[#allocation2 + $0x28] sm:$0xff] }
 0x13d   : > { %749 = vst [vmem:[#allocation2] sm:$0xff] %v717_v62  ;;  %v438_v62 = vld [vmem:[#allocation2 + $0x60] sm:$0xff] }
 0x13f   : > { %v647_v1 = vpop.f32.mrf.mxu2 }
 0x140   : > { %v732_v3 = vadd.f32 %v647_v1, %v442_v63  ;;  %v696_v4 = vpop.f32.mrf.mxu3  ;;  %v439_v1 = vld [vmem:[#allocation2 + $0xf0] sm:$0xff] }
 0x141   : > { %v733_v6 = vadd.f32 %v696_v4, %v443_v0  ;;  %v629_v7 = vpop.f32.mrf.mxu0 }
 0x142   : > { %764 = vst [vmem:[#allocation2 + $0x38] sm:$0xff] %v732_v3  ;;  %v718_v8 = vadd.f32 %v629_v7, %v428_v2  ;;  %v678_v9 = vpop.f32.mrf.mxu1  ;;  %v454_v7 = vld [vmem:[#allocation2 + $0xa0] sm:$0xff] }
 0x143   : > { %765 = vst [vmem:[#allocation2 + $0x58] sm:$0xff] %v733_v6  ;;  %v719_v10 = vadd.f32 %v678_v9, %v429_v5 }
 0x144   : > { %750 = vst [vmem:[#allocation2 + $0xd8] sm:$0xff] %v718_v8  ;;  %v455_v8 = vld [vmem:[#allocation2 + $0xf8] sm:$0xff] }
 0x145   : > { %751 = vst [vmem:[#allocation2 + $0x18] sm:$0xff] %v719_v10  ;;  %v440_v10 = vld [vmem:[#allocation2 + $0x8] sm:$0xff] }
 0x147   : > { %v649_v13 = vpop.f32.mrf.mxu2 }
 0x148   : > { %v734_v15 = vadd.f32 %v649_v13, %v444_v11  ;;  %v698_v16 = vpop.f32.mrf.mxu3  ;;  %v441_v13 = vld [vmem:[#allocation2 + $0x78] sm:$0xff] }
 0x149   : > { %v735_v18 = vadd.f32 %v698_v16, %v445_v12  ;;  %v632_v19 = vpop.f32.mrf.mxu0 }
 0x14a   : > { %766 = vst [vmem:[#allocation2 + $0x40] sm:$0xff] %v734_v15  ;;  %v720_v20 = vadd.f32 %v632_v19, %v430_v14  ;;  %v681_v21 = vpop.f32.mrf.mxu1  ;;  %v456_v19 = vld [vmem:[#allocation2 + $0x20] sm:$0xff] }
 0x14b   : > { %767 = vst [vmem:[#allocation2 + $0xc8] sm:$0xff] %v735_v18  ;;  %v721_v22 = vadd.f32 %v681_v21, %v431_v17 }
 0x14c   : > { %752 = vst [vmem:[#allocation2 + $0x50] sm:$0xff] %v720_v20  ;;  %v457_v20 = vld [vmem:[#allocation2 + $0x98] sm:$0xff] }
 0x14d   : > { %753 = vst [vmem:[#allocation2 + $0x68] sm:$0xff] %v721_v22 }
 0x14f   : > { %v652_v25 = vpop.f32.mrf.mxu2 }
 0x150   : > { %v736_v27 = vadd.f32 %v652_v25, %v446_v23  ;;  %v701_v28 = vpop.f32.mrf.mxu3 }
 0x151   : > { %v737_v30 = vadd.f32 %v701_v28, %v447_v24  ;;  %v634_v31 = vpop.f32.mrf.mxu0 }
 0x152   : > { %768 = vst [vmem:[#allocation2 + $0xe0] sm:$0xff] %v736_v27  ;;  %v722_v32 = vadd.f32 %v634_v31, %v432_v26  ;;  %v683_v33 = vpop.f32.mrf.mxu1 }
 0x153   : > { %769 = vst [vmem:[#allocation2 + $0x90] sm:$0xff] %v737_v30  ;;  %v723_v34 = vadd.f32 %v683_v33, %v433_v29 }
 0x154   : > { %754 = vst [vmem:[#allocation2 + $0x30] sm:$0xff] %v722_v32 }
 0x155   : > { %755 = vst [vmem:[#allocation2 + $0x48] sm:$0xff] %v723_v34 }
 0x157   : > { %v654_v37 = vpop.f32.mrf.mxu2 }
 0x158   : > { %v738_v39 = vadd.f32 %v654_v37, %v448_v35  ;;  %v703_v40 = vpop.f32.mrf.mxu3 }
 0x159   : > { %v739_v42 = vadd.f32 %v703_v40, %v449_v36  ;;  %v637_v43 = vpop.f32.mrf.mxu0 }
 0x15a   : > { %770 = vst [vmem:[#allocation2 + $0x70] sm:$0xff] %v738_v39  ;;  %v724_v44 = vadd.f32 %v637_v43, %v434_v38  ;;  %v686_v45 = vpop.f32.mrf.mxu1 }
 0x15b   : > { %771 = vst [vmem:[#allocation2 + $0xc0] sm:$0xff] %v739_v42  ;;  %v725_v46 = vadd.f32 %v686_v45, %v435_v41 }
 0x15c   : > { %756 = vst [vmem:[#allocation2 + $0x80] sm:$0xff] %v724_v44 }
 0x15d   : > { %757 = vst [vmem:[#allocation2 + $0x88] sm:$0xff] %v725_v46 }
 0x15f   : > { %v657_v49 = vpop.f32.mrf.mxu2 }
 0x160   : > { %v740_v51 = vadd.f32 %v657_v49, %v450_v47  ;;  %v706_v52 = vpop.f32.mrf.mxu3 }
 0x161   : > { %v741_v54 = vadd.f32 %v706_v52, %v451_v48  ;;  %v639_v55 = vpop.f32.mrf.mxu0 }
 0x162   : > { %772 = vst [vmem:[#allocation2 + $0xa8] sm:$0xff] %v740_v51  ;;  %v726_v56 = vadd.f32 %v639_v55, %v436_v50  ;;  %v688_v57 = vpop.f32.mrf.mxu1 }
 0x163   : > { %773 = vst [vmem:[#allocation2 + $0xd0] sm:$0xff] %v741_v54  ;;  %v727_v58 = vadd.f32 %v688_v57, %v437_v53 }
 0x164   : > { %758 = vst [vmem:[#allocation2 + $0xe8] sm:$0xff] %v726_v56 }
 0x165   : > { %759 = vst [vmem:[#allocation2 + $0xb8] sm:$0xff] %v727_v58 }
 0x167   : > { %v659_v61 = vpop.f32.mrf.mxu2 }
 0x168   : > { %v742_v63 = vadd.f32 %v659_v61, %v452_v59  ;;  %v708_v0 = vpop.f32.mrf.mxu3 }
 0x169   : > { %v743_v2 = vadd.f32 %v708_v0, %v453_v60  ;;  %v642_v3 = vpop.f32.mrf.mxu0 }
 0x16a   : > { %774 = vst [vmem:[#allocation2 + $0x10] sm:$0xff] %v742_v63  ;;  %v728_v4 = vadd.f32 %v642_v3, %v438_v62  ;;  %v691_v5 = vpop.f32.mrf.mxu1 }
 0x16b   : > { %775 = vst [vmem:[#allocation2 + $0x28] sm:$0xff] %v743_v2  ;;  %v729_v6 = vadd.f32 %v691_v5, %v439_v1 }
 0x16c   : > { %760 = vst [vmem:[#allocation2 + $0x60] sm:$0xff] %v728_v4 }
 0x16d   : > { %761 = vst [vmem:[#allocation2 + $0xf0] sm:$0xff] %v729_v6 }
 0x16f   : > { %v662_v9 = vpop.f32.mrf.mxu2 }
 0x170   : > { %v744_v11 = vadd.f32 %v662_v9, %v454_v7  ;;  %v711_v12 = vpop.f32.mrf.mxu3 }
 0x171   : > { %v745_v14 = vadd.f32 %v711_v12, %v455_v8  ;;  %v644_v15 = vpop.f32.mrf.mxu0 }
 0x172   : > { %776 = vst [vmem:[#allocation2 + $0xa0] sm:$0xff] %v744_v11  ;;  %v730_v16 = vadd.f32 %v644_v15, %v440_v10  ;;  %v693_v17 = vpop.f32.mrf.mxu1 }
 0x173   : > { %777 = vst [vmem:[#allocation2 + $0xf8] sm:$0xff] %v745_v14  ;;  %v731_v18 = vadd.f32 %v693_v17, %v441_v13 }
 0x174   : > { %762 = vst [vmem:[#allocation2 + $0x8] sm:$0xff] %v730_v16 }
 0x175   : > { %763 = vst [vmem:[#allocation2 + $0x78] sm:$0xff] %v731_v18 }
 0x177   : > { %v664_v21 = vpop.f32.mrf.mxu2  ;;  %783 = sbr.rel (%p1323_p3) target bundleno = 422 (0x1a6), region = 60 }
 0x178   : > { %v746_v22 = vadd.f32 %v664_v21, %v456_v19  ;;  %v713_v23 = vpop.f32.mrf.mxu3 }
 0x179   : > { %v747_v24 = vadd.f32 %v713_v23, %v457_v20 }
 0x17a   : > { %778 = vst [vmem:[#allocation2 + $0x20] sm:$0xff] %v746_v22 }
 0x17b   : > { %779 = vst [vmem:[#allocation2 + $0x98] sm:$0xff] %v747_v24 }
 0x17c   : > { %v784_v25 = vld [vmem:[%s2116_s7] sm:$0xff]  ;;  %v880_v27 = vld [vmem:[#allocation2 + $0xb0] sm:$0xff]  ;;  %v785_v30 = vld [vmem:[%s2116_s7 + $0x8] sm:$0xff] }
 0x17d   : > { %v816_v26 = vld [vmem:[%s2123_s11] sm:$0xff]  ;;  %v912_v29 = vmul.f32 1.2, %v880_v27  ;;  %v817_v31 = vld [vmem:[%s2123_s11 + $0x8] sm:$0xff]  ;;  %v786_v35 = vld [vmem:[%s2116_s7 + $0x10] sm:$0xff] }
 0x17e   : > { %v848_v28 = vmul.f32 %v816_v26, %v784_v25  ;;  %v881_v32 = vld [vmem:[#allocation2] sm:$0xff]  ;;  %v849_v33 = vmul.f32 %v817_v31, %v785_v30  ;;  %v818_v36 = vld [vmem:[%s2123_s11 + $0x10] sm:$0xff]  ;;  %v882_v37 = vld [vmem:[#allocation2 + $0xd8] sm:$0xff] }
 0x17f   : > { %v913_v34 = vmul.f32 1.2, %v881_v32  ;;  %v850_v39 = vmul.f32 %v818_v36, %v786_v35  ;;  %v914_v40 = vmul.f32 1.2, %v882_v37  ;;  %v787_v41 = vld [vmem:[%s2116_s7 + $0x18] sm:$0xff]  ;;  %v788_v47 = vld [vmem:[%s2116_s7 + $0x20] sm:$0xff] }
 0x180   : > { %v944_v38 = vadd.f32 %v912_v29, %v848_v28  ;;  %v819_v42 = vld [vmem:[%s2123_s11 + $0x18] sm:$0xff]  ;;  %v820_v48 = vld [vmem:[%s2123_s11 + $0x20] sm:$0xff]  ;;  %v884_v49 = vld [vmem:[#allocation2 + $0x50] sm:$0xff] }
 0x181   : > { %v883_v43 = vld [vmem:[#allocation2 + $0x18] sm:$0xff]  ;;  %v945_v44 = vadd.f32 %v913_v34, %v849_v33  ;;  %v851_v45 = vmul.f32 %v819_v42, %v787_v41  ;;  %v946_v50 = vadd.f32 %v914_v40, %v850_v39  ;;  %v852_v51 = vmul.f32 %v820_v48, %v788_v47  ;;  %v789_v53 = vld [vmem:[%s2116_s7 + $0x28] sm:$0xff]  ;;  %v790_v59 = vld [vmem:[%s2116_s7 + $0x30] sm:$0xff] }
 0x182   : > { %v915_v46 = vmul.f32 1.2, %v883_v43  ;;  %976 = vst [vmem:[%s2143_s21] sm:$0xff] %v944_v38  ;;  %v916_v52 = vmul.f32 1.2, %v884_v49  ;;  %v821_v54 = vld [vmem:[%s2123_s11 + $0x28] sm:$0xff]  ;;  %v822_v60 = vld [vmem:[%s2123_s11 + $0x30] sm:$0xff] }
 0x183   : > { %v885_v55 = vld [vmem:[#allocation2 + $0x68] sm:$0xff]  ;;  %977 = vst [vmem:[%s2143_s21 + $0x8] sm:$0xff] %v945_v44  ;;  %v853_v57 = vmul.f32 %v821_v54, %v789_v53  ;;  %v886_v61 = vld [vmem:[#allocation2 + $0x30] sm:$0xff]  ;;  %v854_v63 = vmul.f32 %v822_v60, %v790_v59  ;;  %v791_v1 = vld [vmem:[%s2116_s7 + $0x38] sm:$0xff] }
 0x184   : > { %v947_v56 = vadd.f32 %v915_v46, %v851_v45  ;;  %v917_v58 = vmul.f32 1.2, %v885_v55  ;;  %978 = vst [vmem:[%s2143_s21 + $0x10] sm:$0xff] %v946_v50  ;;  %v948_v62 = vadd.f32 %v916_v52, %v852_v51  ;;  %v918_v0 = vmul.f32 1.2, %v886_v61  ;;  %v823_v2 = vld [vmem:[%s2123_s11 + $0x38] sm:$0xff] }
 0x185   : > { %v887_v3 = vld [vmem:[#allocation2 + $0x48] sm:$0xff]  ;;  %v855_v5 = vmul.f32 %v823_v2, %v791_v1  ;;  %v792_v7 = vld [vmem:[%s2116_s7 + $0x40] sm:$0xff]  ;;  %v794_v19 = vld [vmem:[%s2116_s7 + $0x50] sm:$0xff] }
 0x186   : > { %979 = vst [vmem:[%s2143_s21 + $0x18] sm:$0xff] %v947_v56  ;;  %v949_v4 = vadd.f32 %v917_v58, %v853_v57  ;;  %v919_v6 = vmul.f32 1.2, %v887_v3  ;;  %v824_v8 = vld [vmem:[%s2123_s11 + $0x40] sm:$0xff]  ;;  %v950_v10 = vadd.f32 %v918_v0, %v854_v63  ;;  %v793_v13 = vld [vmem:[%s2116_s7 + $0x48] sm:$0xff]  ;;  %v826_v20 = vld [vmem:[%s2123_s11 + $0x50] sm:$0xff] }
 0x187   : > { %v888_v9 = vld [vmem:[#allocation2 + $0x80] sm:$0xff]  ;;  %980 = vst [vmem:[%s2143_s21 + $0x20] sm:$0xff] %v948_v62  ;;  %v856_v11 = vmul.f32 %v824_v8, %v792_v7  ;;  %v825_v14 = vld [vmem:[%s2123_s11 + $0x48] sm:$0xff]  ;;  %v858_v23 = vmul.f32 %v826_v20, %v794_v19  ;;  %v795_v25 = vld [vmem:[%s2116_s7 + $0x58] sm:$0xff] }
 0x188   : > { %v920_v12 = vmul.f32 1.2, %v888_v9  ;;  %v889_v15 = vld [vmem:[#allocation2 + $0x88] sm:$0xff]  ;;  %981 = vst [vmem:[%s2143_s21 + $0x28] sm:$0xff] %v949_v4  ;;  %v951_v16 = vadd.f32 %v919_v6, %v855_v5  ;;  %v857_v17 = vmul.f32 %v825_v14, %v793_v13  ;;  %v827_v26 = vld [vmem:[%s2123_s11 + $0x58] sm:$0xff]  ;;  %v796_v31 = vld [vmem:[%s2116_s7 + $0x60] sm:$0xff] }
 0x189   : > { %v921_v18 = vmul.f32 1.2, %v889_v15  ;;  %v890_v21 = vld [vmem:[#allocation2 + $0xe8] sm:$0xff]  ;;  %982 = vst [vmem:[%s2143_s21 + $0x30] sm:$0xff] %v950_v10  ;;  %v891_v27 = vld [vmem:[#allocation2 + $0xb8] sm:$0xff]  ;;  %v859_v29 = vmul.f32 %v827_v26, %v795_v25  ;;  %v828_v32 = vld [vmem:[%s2123_s11 + $0x60] sm:$0xff] }
 0x18a   : > { %v952_v22 = vadd.f32 %v920_v12, %v856_v11  ;;  %v922_v24 = vmul.f32 1.2, %v890_v21  ;;  %983 = vst [vmem:[%s2143_s21 + $0x38] sm:$0xff] %v951_v16  ;;  %v923_v30 = vmul.f32 1.2, %v891_v27  ;;  %v892_v33 = vld [vmem:[#allocation2 + $0x60] sm:$0xff]  ;;  %v860_v35 = vmul.f32 %v828_v32, %v796_v31 }
 0x18b   : > { %v953_v28 = vadd.f32 %v921_v18, %v857_v17  ;;  %v924_v36 = vmul.f32 1.2, %v892_v33  ;;  %v797_v37 = vld [vmem:[%s2116_s7 + $0x68] sm:$0xff]  ;;  %v893_v39 = vld [vmem:[#allocation2 + $0xf0] sm:$0xff]  ;;  %v799_v49 = vld [vmem:[%s2116_s7 + $0x78] sm:$0xff] }
 0x18c   : > { %984 = vst [vmem:[%s2143_s21 + $0x40] sm:$0xff] %v952_v22  ;;  %v954_v34 = vadd.f32 %v922_v24, %v858_v23  ;;  %v829_v38 = vld [vmem:[%s2123_s11 + $0x68] sm:$0xff]  ;;  %v955_v40 = vadd.f32 %v923_v30, %v859_v29  ;;  %v925_v42 = vmul.f32 1.2, %v893_v39  ;;  %v798_v43 = vld [vmem:[%s2116_s7 + $0x70] sm:$0xff]  ;;  %v831_v50 = vld [vmem:[%s2123_s11 + $0x78] sm:$0xff] }
 0x18d   : > { %985 = vst [vmem:[%s2143_s21 + $0x48] sm:$0xff] %v953_v28  ;;  %v861_v41 = vmul.f32 %v829_v38, %v797_v37  ;;  %v830_v44 = vld [vmem:[%s2123_s11 + $0x70] sm:$0xff]  ;;  %v894_v45 = vld [vmem:[#allocation2 + $0x8] sm:$0xff]  ;;  %v956_v46 = vadd.f32 %v924_v36, %v860_v35  ;;  %v895_v51 = vld [vmem:[#allocation2 + $0x78] sm:$0xff]  ;;  %v863_v53 = vmul.f32 %v831_v50, %v799_v49 }
 0x18e   : > { %986 = vst [vmem:[%s2143_s21 + $0x50] sm:$0xff] %v954_v34  ;;  %v862_v47 = vmul.f32 %v830_v44, %v798_v43  ;;  %v926_v48 = vmul.f32 1.2, %v894_v45  ;;  %v927_v54 = vmul.f32 1.2, %v895_v51  ;;  %v800_v55 = vld [vmem:[%s2116_s7 + $0x80] sm:$0xff] }
 0x18f   : > { %987 = vst [vmem:[%s2143_s21 + $0x58] sm:$0xff] %v955_v40  ;;  %v957_v52 = vadd.f32 %v925_v42, %v861_v41  ;;  %v832_v56 = vld [vmem:[%s2123_s11 + $0x80] sm:$0xff]  ;;  %v896_v57 = vld [vmem:[#allocation2 + $0x38] sm:$0xff]  ;;  %v801_v61 = vld [vmem:[%s2116_s7 + $0x88] sm:$0xff] }
 0x190   : > { %988 = vst [vmem:[%s2143_s21 + $0x60] sm:$0xff] %v956_v46  ;;  %v958_v58 = vadd.f32 %v926_v48, %v862_v47  ;;  %v864_v59 = vmul.f32 %v832_v56, %v800_v55  ;;  %v928_v60 = vmul.f32 1.2, %v896_v57  ;;  %v833_v62 = vld [vmem:[%s2123_s11 + $0x88] sm:$0xff]  ;;  %v897_v63 = vld [vmem:[#allocation2 + $0x58] sm:$0xff]  ;;  %v959_v0 = vadd.f32 %v927_v54, %v863_v53  ;;  %v802_v3 = vld [vmem:[%s2116_s7 + $0x90] sm:$0xff] }
 0x191   : > { %989 = vst [vmem:[%s2143_s21 + $0x68] sm:$0xff] %v957_v52  ;;  %v865_v1 = vmul.f32 %v833_v62, %v801_v61  ;;  %v929_v2 = vmul.f32 1.2, %v897_v63  ;;  %v834_v4 = vld [vmem:[%s2123_s11 + $0x90] sm:$0xff]  ;;  %v898_v5 = vld [vmem:[#allocation2 + $0x40] sm:$0xff]  ;;  %v803_v9 = vld [vmem:[%s2116_s7 + $0x98] sm:$0xff] }
 0x192   : > { %990 = vst [vmem:[%s2143_s21 + $0x70] sm:$0xff] %v958_v58  ;;  %v960_v6 = vadd.f32 %v928_v60, %v864_v59  ;;  %v866_v7 = vmul.f32 %v834_v4, %v802_v3  ;;  %v930_v8 = vmul.f32 1.2, %v898_v5  ;;  %v835_v10 = vld [vmem:[%s2123_s11 + $0x98] sm:$0xff]  ;;  %v899_v11 = vld [vmem:[#allocation2 + $0xc8] sm:$0xff]  ;;  %v804_v15 = vld [vmem:[%s2116_s7 + $0xa0] sm:$0xff] }
 0x193   : > { %991 = vst [vmem:[%s2143_s21 + $0x78] sm:$0xff] %v959_v0  ;;  %v961_v12 = vadd.f32 %v929_v2, %v865_v1  ;;  %v867_v13 = vmul.f32 %v835_v10, %v803_v9  ;;  %v931_v14 = vmul.f32 1.2, %v899_v11  ;;  %v836_v16 = vld [vmem:[%s2123_s11 + $0xa0] sm:$0xff]  ;;  %v805_v21 = vld [vmem:[%s2116_s7 + $0xa8] sm:$0xff]  ;;  %v901_v23 = vld [vmem:[#allocation2 + $0x90] sm:$0xff] }
 0x194   : > { %v900_v17 = vld [vmem:[#allocation2 + $0xe0] sm:$0xff]  ;;  %992 = vst [vmem:[%s2143_s21 + $0x80] sm:$0xff] %v960_v6  ;;  %v962_v18 = vadd.f32 %v930_v8, %v866_v7  ;;  %v868_v19 = vmul.f32 %v836_v16, %v804_v15  ;;  %v837_v22 = vld [vmem:[%s2123_s11 + $0xa8] sm:$0xff]  ;;  %v933_v26 = vmul.f32 1.2, %v901_v23  ;;  %v806_v27 = vld [vmem:[%s2116_s7 + $0xb0] sm:$0xff] }
 0x195   : > { %v932_v20 = vmul.f32 1.2, %v900_v17  ;;  %993 = vst [vmem:[%s2143_s21 + $0x88] sm:$0xff] %v961_v12  ;;  %v963_v24 = vadd.f32 %v931_v14, %v867_v13  ;;  %v869_v25 = vmul.f32 %v837_v22, %v805_v21  ;;  %v838_v28 = vld [vmem:[%s2123_s11 + $0xb0] sm:$0xff]  ;;  %v807_v33 = vld [vmem:[%s2116_s7 + $0xb8] sm:$0xff]  ;;  %v903_v35 = vld [vmem:[#allocation2 + $0xc0] sm:$0xff] }
 0x196   : > { %v902_v29 = vld [vmem:[#allocation2 + $0x70] sm:$0xff]  ;;  %994 = vst [vmem:[%s2143_s21 + $0x90] sm:$0xff] %v962_v18  ;;  %v870_v31 = vmul.f32 %v838_v28, %v806_v27  ;;  %v839_v34 = vld [vmem:[%s2123_s11 + $0xb8] sm:$0xff]  ;;  %v935_v38 = vmul.f32 1.2, %v903_v35  ;;  %v808_v39 = vld [vmem:[%s2116_s7 + $0xc0] sm:$0xff] }
 0x197   : > { %v964_v30 = vadd.f32 %v932_v20, %v868_v19  ;;  %v934_v32 = vmul.f32 1.2, %v902_v29  ;;  %995 = vst [vmem:[%s2143_s21 + $0x98] sm:$0xff] %v963_v24  ;;  %v965_v36 = vadd.f32 %v933_v26, %v869_v25  ;;  %v871_v37 = vmul.f32 %v839_v34, %v807_v33  ;;  %v840_v40 = vld [vmem:[%s2123_s11 + $0xc0] sm:$0xff]  ;;  %v904_v41 = vld [vmem:[#allocation2 + $0xa8] sm:$0xff]  ;;  %v905_v47 = vld [vmem:[#allocation2 + $0xd0] sm:$0xff] }
 0x198   : > { %v872_v43 = vmul.f32 %v840_v40, %v808_v39  ;;  %v936_v44 = vmul.f32 1.2, %v904_v41  ;;  %v809_v45 = vld [vmem:[%s2116_s7 + $0xc8] sm:$0xff]  ;;  %v937_v50 = vmul.f32 1.2, %v905_v47  ;;  %v810_v51 = vld [vmem:[%s2116_s7 + $0xd0] sm:$0xff] }
 0x199   : > { %996 = vst [vmem:[%s2143_s21 + $0xa0] sm:$0xff] %v964_v30  ;;  %v966_v42 = vadd.f32 %v934_v32, %v870_v31  ;;  %v841_v46 = vld [vmem:[%s2123_s11 + $0xc8] sm:$0xff]  ;;  %v967_v48 = vadd.f32 %v935_v38, %v871_v37  ;;  %v842_v52 = vld [vmem:[%s2123_s11 + $0xd0] sm:$0xff]  ;;  %v811_v57 = vld [vmem:[%s2116_s7 + $0xd8] sm:$0xff] }
 0x19a   : > { %997 = vst [vmem:[%s2143_s21 + $0xa8] sm:$0xff] %v965_v36  ;;  %v873_v49 = vmul.f32 %v841_v46, %v809_v45  ;;  %v906_v53 = vld [vmem:[#allocation2 + $0x10] sm:$0xff]  ;;  %v968_v54 = vadd.f32 %v936_v44, %v872_v43  ;;  %v874_v55 = vmul.f32 %v842_v52, %v810_v51  ;;  %v843_v58 = vld [vmem:[%s2123_s11 + $0xd8] sm:$0xff]  ;;  %v907_v59 = vld [vmem:[#allocation2 + $0x28] sm:$0xff] }
 0x19b   : > { %998 = vst [vmem:[%s2143_s21 + $0xb0] sm:$0xff] %v966_v42  ;;  %v938_v56 = vmul.f32 1.2, %v906_v53  ;;  %v875_v61 = vmul.f32 %v843_v58, %v811_v57  ;;  %v939_v62 = vmul.f32 1.2, %v907_v59  ;;  %v812_v63 = vld [vmem:[%s2116_s7 + $0xe0] sm:$0xff] }
 0x19c   : > { %999 = vst [vmem:[%s2143_s21 + $0xb8] sm:$0xff] %v967_v48  ;;  %v969_v60 = vadd.f32 %v937_v50, %v873_v49  ;;  %v844_v0 = vld [vmem:[%s2123_s11 + $0xe0] sm:$0xff]  ;;  %v813_v5 = vld [vmem:[%s2116_s7 + $0xe8] sm:$0xff]  ;;  %v909_v7 = vld [vmem:[#allocation2 + $0xf8] sm:$0xff] }
 0x19d   : > { %v908_v1 = vld [vmem:[#allocation2 + $0xa0] sm:$0xff]  ;;  %1000 = vst [vmem:[%s2143_s21 + $0xc0] sm:$0xff] %v968_v54  ;;  %v970_v2 = vadd.f32 %v938_v56, %v874_v55  ;;  %v876_v3 = vmul.f32 %v844_v0, %v812_v63  ;;  %v845_v6 = vld [vmem:[%s2123_s11 + $0xe8] sm:$0xff]  ;;  %v971_v8 = vadd.f32 %v939_v62, %v875_v61  ;;  %v941_v10 = vmul.f32 1.2, %v909_v7  ;;  %v814_v11 = vld [vmem:[%s2116_s7 + $0xf0] sm:$0xff] }
 0x19e   : > { %v940_v4 = vmul.f32 1.2, %v908_v1  ;;  %1001 = vst [vmem:[%s2143_s21 + $0xc8] sm:$0xff] %v969_v60  ;;  %v877_v9 = vmul.f32 %v845_v6, %v813_v5  ;;  %v846_v12 = vld [vmem:[%s2123_s11 + $0xf0] sm:$0xff]  ;;  %v910_v13 = vld [vmem:[#allocation2 + $0x20] sm:$0xff]  ;;  %v815_v17 = vld [vmem:[%s2116_s7 + $0xf8] sm:$0xff] }
 0x19f   : > { %1002 = vst [vmem:[%s2143_s21 + $0xd0] sm:$0xff] %v970_v2  ;;  %v878_v15 = vmul.f32 %v846_v12, %v814_v11  ;;  %v942_v16 = vmul.f32 1.2, %v910_v13  ;;  %v847_v18 = vld [vmem:[%s2123_s11 + $0xf8] sm:$0xff] }
 0x1a0   : > { %v972_v14 = vadd.f32 %v940_v4, %v876_v3  ;;  %v911_v19 = vld [vmem:[#allocation2 + $0x98] sm:$0xff]  ;;  %1003 = vst [vmem:[%s2143_s21 + $0xd8] sm:$0xff] %v971_v8  ;;  %v973_v20 = vadd.f32 %v941_v10, %v877_v9  ;;  %v879_v21 = vmul.f32 %v847_v18, %v815_v17 }
 0x1a1   : > { %v943_v22 = vmul.f32 1.2, %v911_v19  ;;  %v974_v23 = vadd.f32 %v942_v16, %v878_v15 }
 0x1a2   : > { %1004 = vst [vmem:[%s2143_s21 + $0xe0] sm:$0xff] %v972_v14 }
 0x1a3   : > { %1005 = vst [vmem:[%s2143_s21 + $0xe8] sm:$0xff] %v973_v20  ;;  %v975_v24 = vadd.f32 %v943_v22, %v879_v21 }
 0x1a4   : > { %1006 = vst [vmem:[%s2143_s21 + $0xf0] sm:$0xff] %v974_v23 }
 0x1a5   : > { %1007 = vst [vmem:[%s2143_s21 + $0xf8] sm:$0xff] %v975_v24 }
 0x1a6 PF: > { %s2423_s15 = sld [smem:[#allocation21_spill]]  ;;  %s1024_s22 = sshll.u32 %s2143_s21, 4  ;;  %s1025_s22 = int_to_ptr.vmem [resolvable:$true] %s1024_s22 }
 0x1a7   : > { %s2424_s18 = sld [smem:[#allocation22_spill]]  ;;  %s1009_s10 = scalar_lea.sflag [#allocation5], %s2112_s4 }
 0x1a8   : > { %s2426_s25 = sld [smem:[#allocation35_spill]] }
 0x1ac   : > { %s1326_s8 = sshll.u32 %s2423_s15, 1 }
 0x1ad   : > { %s1359_s1 = sshll.u32 %s2424_s18, 6 }
 0x1ae   : > { %s1021_s7 = sadd.s32 %s1359_s1, %s1326_s8  ;;  %s2427_s3 = smov %s2426_s25 }
 0x1af   : > { %s1328_s29 = sshll.u32 %s1021_s7, 3  ;;  %s1684_s21 = scalar_lea.hbm %s2427_s3, 1024 }
 0x1b0   : > { %s1023_s26 = scalar_lea.hbm %s2426_s25, %s1328_s29 }
 0x1b1   : > { %s1026_s5 = sshll.u32 %s1023_s26, 4  ;;  %s1027_s5 = int_to_ptr.hbm [resolvable:$true] %s1026_s5 }
 0x1b2   : > { %s1678_s14 = sshra.s32 %s1027_s5, 4  ;;  %s1679_s14 = int_to_ptr.hbm [resolvable:$true] %s1678_s14 }
 0x1b3   : > { %s1680_s0 = scalar_lea.hbm %s1679_s14, 256  ;;  %p1685_p12 = scmp.lt.s32.totalorder %s1679_s14, %s2427_s3 }
 0x1b4   : > { %p1681_p7 = scmp.ne.s32.totalorder %s1679_s14, %s1680_s0  ;;  %p1686_p11 = scmp.lt.s32.totalorder %s1684_s21, %s1680_s0 }
 0x1b6   : > { %p1682_p10 = pnand %p1681_p7, %p1978_p8  ;;  %p1687_p13 = por %p1686_p11, %p1685_p12 }
 0x1b8   : > { %p1683_p0 = pneg %p1682_p10 }
 0x1ba   : > { %p1688_p6 = pnand %p1687_p13, %p1683_p0 }
 0x1bc   : > { %1691 = shalt.err (!%p1688_p6)
}
 0x1bd   : > { %s1848_s4 = smov 256   ;;  %s1849_s8 = smov 512  }
 0x1be   : > { %s1850_s1 = smov 16  }
 0x1bf   : > { %1384 = dma.vmem_to_hbm [thread:$0]  (%p1978_p8), %s1025_s22, 4096, %s1027_s5, %s1009_s10, %s1848_s4, %s1849_s8, %s1850_s1  }
 0x1c0 PF: > { %s2428_s7 = sld [smem:[#allocation18_spill]]  ;;  %p1404_p2 = scmp.ge.s32.totalorder %s1838_s30, 2 }
 0x1c2   : > { %p1400_p4 = pnand %p1404_p2, %p1982_p9 }
 0x1c4   : > { %p1401_p5 = pneg %p1400_p4 }
 0x1c6   : > { %s1041_s24 = sand.u32 1, %s2428_s7  }
 0x1c7   : > { %s1042_s11 = scalar_lea.sflag [#allocation5], %s1041_s24 }
 0x1c8   : > { %1773 = dma.done.wait (%p1401_p5), %s1042_s11, 4096  }
 0x1c9   : > { %1775 = vsyncadd (%p1401_p5), %s1042_s11, 4294963200  ;;  %s26_s30 = sadd.s32 1, %s1838_s30   ;;  %s2431_s21 = sld [smem:[#allocation19_spill]] }
 0x1ca   : > { %p2305_p1 = scmp.ge.s32.totalorder %s26_s30, 10   ;;  %s2432_s9 = sld [smem:[#allocation30_spill]] }
 0x1cb   : > { %s2433_s26 = sld [smem:[#allocation23_spill]]  ;;  %s2437_s15 = smov %s1782_s16 }
 0x1cc   : > { %s2434_s5 = sld [smem:[#allocation27_spill]]  ;;  %s2439_s16 = smov %s1786_s17 }
 0x1cd   : > { %s2435_s10 = sld [smem:[#allocation28_spill]]  ;;  %s2440_s17 = smov %s2089_s2 }
 0x1ce   : > { %s2436_s29 = sld [smem:[#allocation29_spill]]  ;;  %s2441_s18 = smov %s1794_s19 }
 0x1cf   : > { %s2442_s19 = smov %s1798_s20  ;;  %s2443_s20 = smov %s2077_s12 }
 0x1d0   : > { %s2444_s22 = smov %s1810_s23  ;;  %s2445_s23 = smov %s2432_s9 }
 0x1d1   : > { %s2446_s24 = smov %s1826_s27  ;;  %s2447_s25 = smov %s1830_s28 }
 0x1d2   : > { %s2448_s27 = smov %s2434_s5  ;;  %25 = sbr.rel (!%p2305_p1) target bundleno = 21 (0x15), region = 126 }
 0x1d3   : > { %s2449_s28 = smov %s2435_s10 }
 0x1d7   :  { %1048 = vsyncpa [#allocation4], 1 }
 0x1d8   :  { %1050 = vsyncpa [#allocation4 + $0x1], 1 }
 0x1d9   :  { %1051 = vsyncpa [#allocation7], 1 }
 0x1da   :  { %1053 = vsyncpa [#allocation7 + $0x1], 1 }
 0x1db   :  { %1054 = vsyncpa [#allocation10], 1 }
 0x1dc   :  { %1056 = vsyncpa [#allocation10 + $0x1], 1 }
 0x1dd   :  { %1057 = vsyncpa [#allocation5], 1 }
 0x1de   :  { %1059 = vsyncpa [#allocation5 + $0x1], 1 }

</bundles_post_ra>
